<compile_context>
chip_gen: v6e
topology: v6e:2x2x1
jax: 0.10.0
libtpu: 0.0.40
codegen_flags: <defaults>
</compile_context>

<pallas_src>
import jax
import jax.numpy as jnp
from jax.experimental import pallas as pl
from jax.experimental.pallas import tpu as pltpu

EPS = 1e-5


def _block_kernel(x_ref, sud_ref, bw1_ref, g1_ref, be1_ref,
                  bw2_ref, g2_ref, be2_ref, rfold_ref, rbcast_ref, o_ref):
    # x_ref:     (M, WC)     input rows, M = N*H, WC = W*C (channels fastest in lane)
    # sud_ref:   (2M, M)     stacked 0/1 row-shift matrices [S_up; S_dn];
    #                        S_up@v = row above (0 at h==0), S_dn@v = row below
    #                        (0 at h==H-1)  -> SAME zero padding in H for free.
    # bw*_ref:   (3*WC, WC)  banded conv weights, K-stacked per dy band (dx taps,
    #                        channel mixing and W zero padding folded in).
    # g*/be*:    (1, C)      BN affine params.
    # rfold_ref: (WC, C)     0/1 fold lanes -> channels.
    # rbcast_ref:(C, WC)     0/1 broadcast channels -> lanes.
    # o_ref:     (M, WC)     lane-dense output.
    M, WC = x_ref.shape
    C = g1_ref.shape[-1]
    W = WC // C
    inv_nhw = 1.0 / float(M * W)

    x = x_ref[...]
    sud = sud_ref[...]

    def conv3x3(v, bw_ref):
        # One small matmul builds both vertical neighbours (image-boundary rows
        # already zeroed by the matrix), then one K=3*WC MXU dot does the conv.
        shifted = jnp.dot(sud, v, preferred_element_type=jnp.float32)    # (2M, WC)
        lhs = jnp.concatenate([shifted[:M], v, shifted[M:]], axis=1)     # (M, 3WC)
        return jnp.dot(lhs, bw_ref[...], preferred_element_type=jnp.float32)

    def bn_fold(y, g_ref, be_ref):
        # Training-mode BN folded to per-lane scale/shift, batched tiny matmuls.
        # TODO(synk): single-pass E[y^2]-E[y]^2 variance; fine at 1e-4 here.
        ssum = jnp.sum(y, axis=0, keepdims=True)                         # (1, WC)
        ssq = jnp.sum(y * y, axis=0, keepdims=True)                      # (1, WC)
        stats = jnp.concatenate([ssum, ssq], axis=0)                     # (2, WC)
        cstats = jnp.dot(stats, rfold_ref[...],
                         preferred_element_type=jnp.float32)             # (2, C)
        mean = cstats[0:1, :] * inv_nhw
        var = cstats[1:2, :] * inv_nhw - mean * mean
        scale = g_ref[...] * jax.lax.rsqrt(var + EPS)                    # (1, C)
        shift = be_ref[...] - mean * scale                               # (1, C)
        st = jnp.concatenate([scale, shift], axis=0)                     # (2, C)
        lanes = jnp.dot(st, rbcast_ref[...],
                        preferred_element_type=jnp.float32)              # (2, WC)
        return y * lanes[0:1, :] + lanes[1:2, :]

    # ---- conv1 -> bn1 -> relu ----
    y1 = jnp.maximum(bn_fold(conv3x3(x, bw1_ref), g1_ref, be1_ref), 0.0)
    # ---- conv2 -> bn2 (y1 stays in registers, no scratch round trip) ----
    y2 = bn_fold(conv3x3(y1, bw2_ref), g2_ref, be2_ref)
    # ---- residual add + relu (identity is the original x, still in registers) ----
    o_ref[...] = jnp.maximum(y2 + x, 0.0)


def _band_weights(w_oihw, W):
    """OIHW conv weight -> (3*W*Cin, W*Cout) banded matrix, K-stacked over dy.

    Rows [dy*W*Cin : (dy+1)*W*Cin] hold the dy band; the dx taps, channel mixing
    and the SAME zero padding along W are folded into the K dimension.
    """
    Cout, Cin, _, _ = w_oihw.shape
    wt = jnp.transpose(w_oihw, (2, 3, 1, 0)).astype(jnp.float32)   # (3, 3, Cin, Cout)
    bands = []
    for dy in range(3):
        B = jnp.zeros((W * Cin, W * Cout), jnp.float32)
        for dx in range(3):
            # S[iw, w] = 1 iff iw == w + dx - 1 (out-of-range taps drop out == W pad)
            S = jnp.eye(W, k=1 - dx, dtype=jnp.float32)
            B = B + jnp.einsum("iw,cd->icwd", S, wt[dy, dx]).reshape(W * Cin, W * Cout)
        bands.append(B)
    return jnp.concatenate(bands, axis=0)                           # (3*W*Cin, W*Cout)


def _shift_matrix(N, H):
    """(2M, M) stacked 0/1 matrices [S_up; S_dn] with per-image H-boundary zeroing."""
    M = N * H
    m = jnp.arange(M, dtype=jnp.int32)
    h = m % H
    s_up = ((m[:, None] - 1) == m[None, :]) & (h[:, None] > 0)       # picks row m-1
    s_dn = ((m[:, None] + 1) == m[None, :]) & (h[:, None] < H - 1)   # picks row m+1
    return jnp.concatenate([s_up, s_dn], axis=0).astype(jnp.float32)


def init_block_params(key, in_channels, out_channels):
    ks = jax.random.split(key, 6)
    return {
        "w1": 0.05 * jax.random.normal(ks[0], (out_channels, in_channels, 3, 3), jnp.float32),
        "b1": 0.05 * jax.random.normal(ks[1], (out_channels,), jnp.float32),
        "g1": 1.0 + 0.1 * jax.random.normal(ks[2], (out_channels,), jnp.float32),
        "be1": 0.1 * jax.random.normal(ks[3], (out_channels,), jnp.float32),
        "w2": 0.05 * jax.random.normal(ks[4], (out_channels, out_channels, 3, 3), jnp.float32),
        "b2": 0.05 * jax.random.normal(ks[5], (out_channels,), jnp.float32),
        "g2": jnp.ones((out_channels,), jnp.float32),
        "be2": jnp.zeros((out_channels,), jnp.float32),
    }


def block_forward(x_nchw, params):
    """ResNet basic Block forward.  x_nchw: (N, C, H, W) float32, stride=1."""
    N, C, H, W = x_nchw.shape
    Cout = params["w1"].shape[0]
    assert params["w1"].shape[1] == C and Cout == C, "identity path requires Cin == Cout"
    WC = W * C
    M = N * H

    # NCHW -> flat lane-dense row slab (no padding passes; W pad lives in the
    # banded weights, H pad lives in the shift matrix).  Conv biases are NOT
    # passed: a per-channel constant is cancelled exactly by training-mode BN.
    x2d = jnp.transpose(x_nchw, (0, 2, 3, 1)).reshape(M, WC)

    bw1 = _band_weights(params["w1"], W)                  # (3*WC, WC)
    bw2 = _band_weights(params["w2"], W)                  # (3*WC, WC)
    s_ud = _shift_matrix(N, H)                            # (2M, M)

    lane_ch = jnp.arange(WC, dtype=jnp.int32) % C
    r_fold = (lane_ch[:, None] == jnp.arange(C, dtype=jnp.int32)[None, :]).astype(jnp.float32)
    r_bcast = jnp.transpose(r_fold)                       # (C, WC)

    def row(v):
        return v.reshape(1, -1).astype(jnp.float32)

    args = (x2d, s_ud, bw1, row(params["g1"]), row(params["be1"]),
            bw2, row(params["g2"]), row(params["be2"]), r_fold, r_bcast)

    vmem_spec = pl.BlockSpec(memory_space=pltpu.MemorySpace.VMEM)
    out2d = pl.pallas_call(
        _block_kernel,
        out_shape=jax.ShapeDtypeStruct((M, WC), jnp.float32),
        in_specs=[vmem_spec] * len(args),
        out_specs=vmem_spec,
        compiler_params=pltpu.CompilerParams(vmem_limit_bytes=32 * 1024 * 1024),
    )(*args)

    out_nhwc = out2d.reshape(N, H, W, C)
    return jnp.transpose(out_nhwc, (0, 3, 1, 2))          # back to NCHW


def block_forward_ref(x_nchw, params):
    """Pure-JAX reference (lax.conv, biases included, training-mode BN)."""
    x = jnp.transpose(x_nchw, (0, 2, 3, 1))

    def conv(x, w, b):
        w_hwio = jnp.transpose(w, (2, 3, 1, 0))
        y = jax.lax.conv_general_dilated(
            x, w_hwio, window_strides=(1, 1), padding="SAME",
            dimension_numbers=("NHWC", "HWIO", "NHWC"))
        return y + b

    def bn(y, g, be):
        mean = jnp.mean(y, axis=(0, 1, 2), keepdims=True)
        var = jnp.mean((y - mean) ** 2, axis=(0, 1, 2), keepdims=True)
        return (y - mean) * jax.lax.rsqrt(var + EPS) * g + be

    y = jnp.maximum(bn(conv(x, params["w1"], params["b1"]), params["g1"], params["be1"]), 0.0)
    y = bn(conv(y, params["w2"], params["b2"]), params["g2"], params["be2"])
    y = jnp.maximum(y + x, 0.0)
    return jnp.transpose(y, (0, 3, 1, 2))


if __name__ == "__main__":
    key = jax.random.PRNGKey(0)
    k_x, k_p = jax.random.split(key)

    # channels=8, spatial 16x16 -> W*C = 128 (fully lane-dense working layout)
    N, C, H, W = 2, 8, 16, 16
    x = jax.random.normal(k_x, (N, C, H, W), jnp.float32)
    params = init_block_params(k_p, C, C)

    out = block_forward(x, params)
    jax.block_until_ready(out)

    ref = block_forward_ref(x, params)
    assert out.shape == (N, C, H, W)
    err = float(jnp.max(jnp.abs(out - ref)))
    assert jnp.allclose(out, ref, atol=1e-4, rtol=1e-4), f"max abs err = {err}"

    print("KERNEL_OK")
</pallas_src>

<mosaic_0001>
module attributes {stable_mosaic.version = 11 : i64} {
  func.func @_block_kernel(%arg0: memref<32x128xf32, #tpu.memory_space<vmem>>, %arg1: memref<64x32xf32, #tpu.memory_space<vmem>>, %arg2: memref<384x128xf32, #tpu.memory_space<vmem>>, %arg3: memref<1x8xf32, #tpu.memory_space<vmem>>, %arg4: memref<1x8xf32, #tpu.memory_space<vmem>>, %arg5: memref<384x128xf32, #tpu.memory_space<vmem>>, %arg6: memref<1x8xf32, #tpu.memory_space<vmem>>, %arg7: memref<1x8xf32, #tpu.memory_space<vmem>>, %arg8: memref<128x8xf32, #tpu.memory_space<vmem>>, %arg9: memref<8x128xf32, #tpu.memory_space<vmem>>, %arg10: memref<32x128xf32, #tpu.memory_space<vmem>>) attributes {dimension_semantics = [], scalar_prefetch = 0 : i64, scratch_operands = 0 : i64, tpu.core_type = #tpu.core_type<tc>} {
    %c0 = arith.constant 0 : index
    %c0_0 = arith.constant 0 : index
    %0 = vector.load %arg0[%c0, %c0_0] : memref<32x128xf32, #tpu.memory_space<vmem>>, vector<32x128xf32>
    %c0_1 = arith.constant 0 : index
    %c0_2 = arith.constant 0 : index
    %1 = vector.load %arg1[%c0_1, %c0_2] : memref<64x32xf32, #tpu.memory_space<vmem>>, vector<64x32xf32>
    %cst = arith.constant dense<0.000000e+00> : vector<64x128xf32>
    %2 = tpu.matmul %1, %0, %cst {dimension_numbers = #tpu.dot_dimension_numbers<[1], [0], [0], [1], [0, 0, 1, 1], [], []>} : vector<64x32xf32>, vector<32x128xf32>, vector<64x128xf32> -> vector<64x128xf32>
    %3 = vector.extract_strided_slice %2 {offsets = [0, 0], sizes = [32, 128], strides = [1, 1]} : vector<64x128xf32> to vector<32x128xf32>
    %4 = vector.extract_strided_slice %2 {offsets = [32, 0], sizes = [32, 128], strides = [1, 1]} : vector<64x128xf32> to vector<32x128xf32>
    %5 = tpu.concatenate %3, %0, %4 in 1 : vector<32x128xf32>, vector<32x128xf32>, vector<32x128xf32> -> vector<32x384xf32>
    %c0_3 = arith.constant 0 : index
    %c0_4 = arith.constant 0 : index
    %6 = vector.load %arg2[%c0_3, %c0_4] : memref<384x128xf32, #tpu.memory_space<vmem>>, vector<384x128xf32>
    %cst_5 = arith.constant dense<0.000000e+00> : vector<32x128xf32>
    %7 = tpu.matmul %5, %6, %cst_5 {dimension_numbers = #tpu.dot_dimension_numbers<[1], [0], [0], [1], [0, 0, 1, 1], [], []>} : vector<32x384xf32>, vector<384x128xf32>, vector<32x128xf32> -> vector<32x128xf32>
    %cst_6 = arith.constant dense<0.000000e+00> : vector<128xf32>
    %8 = vector.multi_reduction <add>, %7, %cst_6 [0] : vector<32x128xf32> to vector<128xf32>
    %9 = vector.shape_cast %8 : vector<128xf32> to vector<1x128xf32>
    %10 = arith.mulf %7, %7 : vector<32x128xf32>
    %cst_7 = arith.constant dense<0.000000e+00> : vector<128xf32>
    %11 = vector.multi_reduction <add>, %10, %cst_7 [0] : vector<32x128xf32> to vector<128xf32>
    %12 = vector.shape_cast %11 : vector<128xf32> to vector<1x128xf32>
    %13 = tpu.concatenate %9, %12 in 0 : vector<1x128xf32>, vector<1x128xf32> -> vector<2x128xf32>
    %c0_8 = arith.constant 0 : index
    %c0_9 = arith.constant 0 : index
    %14 = vector.load %arg8[%c0_8, %c0_9] : memref<128x8xf32, #tpu.memory_space<vmem>>, vector<128x8xf32>
    %cst_10 = arith.constant dense<0.000000e+00> : vector<2x8xf32>
    %15 = tpu.matmul %13, %14, %cst_10 {dimension_numbers = #tpu.dot_dimension_numbers<[1], [0], [0], [1], [0, 0, 1, 1], [], []>} : vector<2x128xf32>, vector<128x8xf32>, vector<2x8xf32> -> vector<2x8xf32>
    %16 = vector.extract_strided_slice %15 {offsets = [0, 0], sizes = [1, 8], strides = [1, 1]} : vector<2x8xf32> to vector<1x8xf32>
    %cst_11 = arith.constant 0.001953125 : f32
    %17 = vector.broadcast %cst_11 : f32 to vector<1x8xf32>
    %18 = arith.mulf %16, %17 : vector<1x8xf32>
    %19 = vector.extract_strided_slice %15 {offsets = [1, 0], sizes = [1, 8], strides = [1, 1]} : vector<2x8xf32> to vector<1x8xf32>
    %cst_12 = arith.constant 0.001953125 : f32
    %20 = vector.broadcast %cst_12 : f32 to vector<1x8xf32>
    %21 = arith.mulf %19, %20 : vector<1x8xf32>
    %22 = arith.mulf %18, %18 : vector<1x8xf32>
    %23 = arith.subf %21, %22 : vector<1x8xf32>
    %c0_13 = arith.constant 0 : index
    %c0_14 = arith.constant 0 : index
    %24 = vector.load %arg3[%c0_13, %c0_14] : memref<1x8xf32, #tpu.memory_space<vmem>>, vector<1x8xf32>
    %cst_15 = arith.constant 9.99999974E-6 : f32
    %25 = vector.broadcast %cst_15 : f32 to vector<1x8xf32>
    %26 = arith.addf %23, %25 : vector<1x8xf32>
    %27 = math.rsqrt %26 : vector<1x8xf32>
    %28 = arith.mulf %24, %27 : vector<1x8xf32>
    %c0_16 = arith.constant 0 : index
    %c0_17 = arith.constant 0 : index
    %29 = vector.load %arg4[%c0_16, %c0_17] : memref<1x8xf32, #tpu.memory_space<vmem>>, vector<1x8xf32>
    %30 = arith.mulf %18, %28 : vector<1x8xf32>
    %31 = arith.subf %29, %30 : vector<1x8xf32>
    %32 = tpu.concatenate %28, %31 in 0 : vector<1x8xf32>, vector<1x8xf32> -> vector<2x8xf32>
    %c0_18 = arith.constant 0 : index
    %c0_19 = arith.constant 0 : index
    %33 = vector.load %arg9[%c0_18, %c0_19] : memref<8x128xf32, #tpu.memory_space<vmem>>, vector<8x128xf32>
    %cst_20 = arith.constant dense<0.000000e+00> : vector<2x128xf32>
    %34 = tpu.matmul %32, %33, %cst_20 {dimension_numbers = #tpu.dot_dimension_numbers<[1], [0], [0], [1], [0, 0, 1, 1], [], []>} : vector<2x8xf32>, vector<8x128xf32>, vector<2x128xf32> -> vector<2x128xf32>
    %35 = vector.extract_strided_slice %34 {offsets = [0, 0], sizes = [1, 128], strides = [1, 1]} : vector<2x128xf32> to vector<1x128xf32>
    %36 = vector.broadcast %35 : vector<1x128xf32> to vector<32x128xf32>
    %37 = arith.mulf %7, %36 : vector<32x128xf32>
    %38 = vector.extract_strided_slice %34 {offsets = [1, 0], sizes = [1, 128], strides = [1, 1]} : vector<2x128xf32> to vector<1x128xf32>
    %39 = vector.broadcast %38 : vector<1x128xf32> to vector<32x128xf32>
    %40 = arith.addf %37, %39 : vector<32x128xf32>
    %cst_21 = arith.constant 0.000000e+00 : f32
    %41 = vector.broadcast %cst_21 : f32 to vector<32x128xf32>
    %42 = arith.maximumf %40, %41 : vector<32x128xf32>
    %cst_22 = arith.constant dense<0.000000e+00> : vector<64x128xf32>
    %43 = tpu.matmul %1, %42, %cst_22 {dimension_numbers = #tpu.dot_dimension_numbers<[1], [0], [0], [1], [0, 0, 1, 1], [], []>} : vector<64x32xf32>, vector<32x128xf32>, vector<64x128xf32> -> vector<64x128xf32>
    %44 = vector.extract_strided_slice %43 {offsets = [0, 0], sizes = [32, 128], strides = [1, 1]} : vector<64x128xf32> to vector<32x128xf32>
    %45 = vector.extract_strided_slice %43 {offsets = [32, 0], sizes = [32, 128], strides = [1, 1]} : vector<64x128xf32> to vector<32x128xf32>
    %46 = tpu.concatenate %44, %42, %45 in 1 : vector<32x128xf32>, vector<32x128xf32>, vector<32x128xf32> -> vector<32x384xf32>
    %c0_23 = arith.constant 0 : index
    %c0_24 = arith.constant 0 : index
    %47 = vector.load %arg5[%c0_23, %c0_24] : memref<384x128xf32, #tpu.memory_space<vmem>>, vector<384x128xf32>
    %cst_25 = arith.constant dense<0.000000e+00> : vector<32x128xf32>
    %48 = tpu.matmul %46, %47, %cst_25 {dimension_numbers = #tpu.dot_dimension_numbers<[1], [0], [0], [1], [0, 0, 1, 1], [], []>} : vector<32x384xf32>, vector<384x128xf32>, vector<32x128xf32> -> vector<32x128xf32>
    %cst_26 = arith.constant dense<0.000000e+00> : vector<128xf32>
    %49 = vector.multi_reduction <add>, %48, %cst_26 [0] : vector<32x128xf32> to vector<128xf32>
    %50 = vector.shape_cast %49 : vector<128xf32> to vector<1x128xf32>
    %51 = arith.mulf %48, %48 : vector<32x128xf32>
    %cst_27 = arith.constant dense<0.000000e+00> : vector<128xf32>
    %52 = vector.multi_reduction <add>, %51, %cst_27 [0] : vector<32x128xf32> to vector<128xf32>
    %53 = vector.shape_cast %52 : vector<128xf32> to vector<1x128xf32>
    %54 = tpu.concatenate %50, %53 in 0 : vector<1x128xf32>, vector<1x128xf32> -> vector<2x128xf32>
    %c0_28 = arith.constant 0 : index
    %c0_29 = arith.constant 0 : index
    %55 = vector.load %arg8[%c0_28, %c0_29] : memref<128x8xf32, #tpu.memory_space<vmem>>, vector<128x8xf32>
    %cst_30 = arith.constant dense<0.000000e+00> : vector<2x8xf32>
    %56 = tpu.matmul %54, %55, %cst_30 {dimension_numbers = #tpu.dot_dimension_numbers<[1], [0], [0], [1], [0, 0, 1, 1], [], []>} : vector<2x128xf32>, vector<128x8xf32>, vector<2x8xf32> -> vector<2x8xf32>
    %57 = vector.extract_strided_slice %56 {offsets = [0, 0], sizes = [1, 8], strides = [1, 1]} : vector<2x8xf32> to vector<1x8xf32>
    %cst_31 = arith.constant 0.001953125 : f32
    %58 = vector.broadcast %cst_31 : f32 to vector<1x8xf32>
    %59 = arith.mulf %57, %58 : vector<1x8xf32>
    %60 = vector.extract_strided_slice %56 {offsets = [1, 0], sizes = [1, 8], strides = [1, 1]} : vector<2x8xf32> to vector<1x8xf32>
    %cst_32 = arith.constant 0.001953125 : f32
    %61 = vector.broadcast %cst_32 : f32 to vector<1x8xf32>
    %62 = arith.mulf %60, %61 : vector<1x8xf32>
    %63 = arith.mulf %59, %59 : vector<1x8xf32>
    %64 = arith.subf %62, %63 : vector<1x8xf32>
    %c0_33 = arith.constant 0 : index
    %c0_34 = arith.constant 0 : index
    %65 = vector.load %arg6[%c0_33, %c0_34] : memref<1x8xf32, #tpu.memory_space<vmem>>, vector<1x8xf32>
    %cst_35 = arith.constant 9.99999974E-6 : f32
    %66 = vector.broadcast %cst_35 : f32 to vector<1x8xf32>
    %67 = arith.addf %64, %66 : vector<1x8xf32>
    %68 = math.rsqrt %67 : vector<1x8xf32>
    %69 = arith.mulf %65, %68 : vector<1x8xf32>
    %c0_36 = arith.constant 0 : index
    %c0_37 = arith.constant 0 : index
    %70 = vector.load %arg7[%c0_36, %c0_37] : memref<1x8xf32, #tpu.memory_space<vmem>>, vector<1x8xf32>
    %71 = arith.mulf %59, %69 : vector<1x8xf32>
    %72 = arith.subf %70, %71 : vector<1x8xf32>
    %73 = tpu.concatenate %69, %72 in 0 : vector<1x8xf32>, vector<1x8xf32> -> vector<2x8xf32>
    %c0_38 = arith.constant 0 : index
    %c0_39 = arith.constant 0 : index
    %74 = vector.load %arg9[%c0_38, %c0_39] : memref<8x128xf32, #tpu.memory_space<vmem>>, vector<8x128xf32>
    %cst_40 = arith.constant dense<0.000000e+00> : vector<2x128xf32>
    %75 = tpu.matmul %73, %74, %cst_40 {dimension_numbers = #tpu.dot_dimension_numbers<[1], [0], [0], [1], [0, 0, 1, 1], [], []>} : vector<2x8xf32>, vector<8x128xf32>, vector<2x128xf32> -> vector<2x128xf32>
    %76 = vector.extract_strided_slice %75 {offsets = [0, 0], sizes = [1, 128], strides = [1, 1]} : vector<2x128xf32> to vector<1x128xf32>
    %77 = vector.broadcast %76 : vector<1x128xf32> to vector<32x128xf32>
    %78 = arith.mulf %48, %77 : vector<32x128xf32>
    %79 = vector.extract_strided_slice %75 {offsets = [1, 0], sizes = [1, 128], strides = [1, 1]} : vector<2x128xf32> to vector<1x128xf32>
    %80 = vector.broadcast %79 : vector<1x128xf32> to vector<32x128xf32>
    %81 = arith.addf %78, %80 : vector<32x128xf32>
    %82 = arith.addf %81, %0 : vector<32x128xf32>
    %cst_41 = arith.constant 0.000000e+00 : f32
    %83 = vector.broadcast %cst_41 : f32 to vector<32x128xf32>
    %84 = arith.maximumf %82, %83 : vector<32x128xf32>
    %c0_42 = arith.constant 0 : index
    %c0_43 = arith.constant 0 : index
    %85 = vector.load %arg10[%c0_42, %c0_43] : memref<32x128xf32, #tpu.memory_space<vmem>>, vector<32x128xf32>
    tpu.vector_store %arg10[%c0_42, %c0_43], %84 {strides = array<i32>} : memref<32x128xf32, #tpu.memory_space<vmem>>, vector<32x128xf32>,
    return
  }
}

</mosaic_0001>

<bundles_post_ra>
// kernel: tpu_custom_call.1
= control target key start
LH: loop header
LB: loop body
LE: loop exit
PB: predicated region body
PF: predicated region fallthrough
CT: control target
= control target key end

     0   :  { %15 = vsyncpa [#allocation3], 0  ;;  %s2160_s0 = inlined_call_operand.vmem [shape: f32[32,128], index: 0, kind: input, shape index: {}]   ;;  %s2161_s1 = inlined_call_operand.vmem [shape: f32[64,32], index: 1, kind: input, shape index: {}]   ;;  %s2162_s2 = inlined_call_operand.hbm [shape: f32[384,128], index: 2, kind: input, shape index: {}]   ;;  %s2163_s3 = inlined_call_operand.vmem [shape: f32[1,8], index: 3, kind: input, shape index: {}]   ;;  %s2164_s4 = inlined_call_operand.vmem [shape: f32[1,8], index: 4, kind: input, shape index: {}]   ;;  %s2165_s5 = inlined_call_operand.hbm [shape: f32[384,128], index: 5, kind: input, shape index: {}]   ;;  %s2166_s6 = inlined_call_operand.vmem [shape: f32[1,8], index: 6, kind: input, shape index: {}]   ;;  %s2167_s7 = inlined_call_operand.vmem [shape: f32[1,8], index: 7, kind: input, shape index: {}]   ;;  %s2168_s8 = inlined_call_operand.vmem [shape: f32[128,8], index: 8, kind: input, shape index: {}]   ;;  %s2169_s9 = inlined_call_operand.vmem [shape: f32[8,128], index: 9, kind: input, shape index: {}]   ;;  %s2170_s10 = inlined_call_operand.hbm [shape: f32[32,128], index: 10, kind: output, shape index: {}]  }
   0x1   :  { %16 = vsyncpa [#allocation6], 0 }
   0x2   :  { %17 = vsyncpa [#allocation4], 0  ;;  %s1724_s13 = smov [#allocation2]  }
   0x3   :  { %s27_s14 = sshll.u32 %s1724_s13, 4  ;;  %s28_s14 = int_to_ptr.vmem [resolvable:$true] %s27_s14 }
   0x4   :  { %s1666_s15 = scalar_lea.vmem %s28_s14, 6144  ;;  %p1671_p1 = scmp.lt.s32.totalorder %s28_s14, %s28_s14 }
   0x5   :  { %p1667_p0 = scmp.ne.s32.totalorder %s28_s14, %s1666_s15  ;;  %p1672_p2 = scmp.lt.s32.totalorder %s1666_s15, %s1666_s15 }
   0x7   :  { %p1673_p3 = por %p1672_p2, %p1671_p1 }
   0x9   :  { %p1674_p4 = pnand %p1673_p3, %p1667_p0 }
   0xb   :  { %1677 = shalt.err (!%p1674_p4)
}
   0xc   :  { %s1725_s16 = smov 128   ;;  %s1726_s17 = smov 8  }
   0xd   :  { %33 = dma.hbm_to_vmem [thread:$0]  %s2162_s2, 6144, %s28_s14, [#allocation3], %s1725_s16, %s1725_s16, %s1726_s17  }
   0xe   :  { %s1727_s20 = smov [#allocation5]  }
   0xf   :  { %s43_s21 = sshll.u32 %s1727_s20, 4  ;;  %s44_s21 = int_to_ptr.vmem [resolvable:$true] %s43_s21 }
  0x10   :  { %s1686_s22 = scalar_lea.vmem %s44_s21, 6144  ;;  %p1691_p6 = scmp.lt.s32.totalorder %s44_s21, %s44_s21 }
  0x11   :  { %p1687_p5 = scmp.ne.s32.totalorder %s44_s21, %s1686_s22  ;;  %p1692_p7 = scmp.lt.s32.totalorder %s1686_s22, %s1686_s22 }
  0x13   :  { %p1693_p8 = por %p1692_p7, %p1691_p6 }
  0x15   :  { %p1694_p9 = pnand %p1693_p8, %p1687_p5 }
  0x17   :  { %1697 = shalt.err (!%p1694_p9)
}
  0x18   :  { %49 = dma.hbm_to_vmem [thread:$0]  %s2165_s5, 6144, %s44_s21, [#allocation6], %s1725_s16, %s1725_s16, %s1726_s17  }
  0x19   :  { %1718 = dma.done.wait [#allocation3], 6144  }
  0x1a   :  { %1719 = vsyncadd [#allocation3], 4294961152 }
  0x1b   :  { %1720 = dma.done.wait [#allocation6], 6144  }
  0x1c   :  { %1721 = vsyncadd [#allocation6], 4294961152  ;;  %vm76_vm0 = vcmask 261120   ;;  %v1802_v0 = vld [vmem:[%s2160_s0 + $0x18] sm:$0xff]  ;;  %v1807_v1 = vld [vmem:[%s2160_s0 + $0x10] sm:$0xff]  ;;  %vm1729_vm1 = vmmov 0  }
  0x1d   :  { %1446 = vmatprep.subr.mxu1 %v1802_v0  ;;  %v1813_v2 = vld [vmem:[%s2161_s1] sm:$0xff]  ;;  %v1819_v3 = vld [vmem:[%s2160_s0 + $0x8] sm:$0xff]  ;;  %v237_v6 = vld [vmem:[#allocation2 + $0xf8] sm:$0xff]  ;;  %vm446_vm2 = vcmask 1040384   ;;  %vm572_vm3 = vcmask 64512  }
  0x1e   :  { %1447 = vmatpush3.msra.mxu1 %v1802_v0  ;;  %1454 = vmatprep.mubr.msk.f32.mxu1 %vm76_vm0, %v1813_v2  ;;  %v1828_v4 = vld [vmem:[%s2160_s0] sm:$0xff]  ;;  %v1835_v5 = vld [vmem:[%s2161_s1 + $0x8] sm:$0xff]  ;;  %v1841_v7 = vld [vmem:[%s2161_s1 + $0x10] sm:$0xff] }
  0x1f   :  { %1448 = vmatprep.subr.mxu1 %v1807_v1  ;;  %v221_v8 = vld [vmem:[#allocation2 + $0x78] sm:$0xff]  ;;  %v236_v10 = vld [vmem:[#allocation2 + $0xf0] sm:$0xff]  ;;  %v235_v14 = vld [vmem:[#allocation2 + $0xe8] sm:$0xff] }
  0x20   :  { %1449 = vmatpush3.msra.mxu1 %v1807_v1  ;;  %v253_v9 = vld [vmem:[#allocation2 + $0x178] sm:$0xff]  ;;  %v220_v11 = vld [vmem:[#allocation2 + $0x70] sm:$0xff]  ;;  %v1856_v15 = vld [vmem:[%s2161_s1 + $0x20] sm:$0xff] }
  0x21   :  { %1450 = vmatprep.subr.mxu1 %v1819_v3  ;;  %1466 = vmatprep.subr.mxu0 %v253_v9  ;;  %v252_v12 = vld [vmem:[#allocation2 + $0x170] sm:$0xff]  ;;  %v1851_v13 = vld [vmem:[%s2161_s1 + $0x18] sm:$0xff]  ;;  %v219_v16 = vld [vmem:[#allocation2 + $0x68] sm:$0xff] }
  0x22   :  { %1451 = vmatpush3.msra.mxu1 %v1819_v3  ;;  %1467 = vmatpush3.msra.mxu0 %v253_v9  ;;  %v234_v17 = vld [vmem:[#allocation2 + $0xe0] sm:$0xff]  ;;  %v251_v19 = vld [vmem:[#allocation2 + $0x168] sm:$0xff]  ;;  %v233_v21 = vld [vmem:[#allocation2 + $0xd8] sm:$0xff] }
  0x23   :  { %1452 = vmatprep.subr.mxu1 %v1828_v4  ;;  %1468 = vmatprep.subr.mxu0 %v252_v12  ;;  %v218_v18 = vld [vmem:[#allocation2 + $0x60] sm:$0xff]  ;;  %v1865_v20 = vld [vmem:[%s2161_s1 + $0x28] sm:$0xff]  ;;  %v1870_v22 = vld [vmem:[%s2161_s1 + $0x30] sm:$0xff] }
  0x24   :  { %1453 = vmatpush3.msra.mxu1 %v1828_v4  ;;  %v217_v23 = vld [vmem:[#allocation2 + $0x58] sm:$0xff]  ;;  %1469 = vmatpush3.msra.mxu0 %v252_v12  ;;  %v232_v24 = vld [vmem:[#allocation2 + $0xd0] sm:$0xff]  ;;  %v250_v26 = vld [vmem:[#allocation2 + $0x160] sm:$0xff] }
  0x25   :  { %1455 = vmatmul.mubr.msk.f32.vlgmr.msra.gmra.mxu1 %vm76_vm0, %v1835_v5  ;;  %1268 = vmatprep.subr.mxu1 %v237_v6  ;;  %v216_v25 = vld [vmem:[#allocation2 + $0x50] sm:$0xff]  ;;  %v1879_v27 = vld [vmem:[%s2161_s1 + $0x38] sm:$0xff]  ;;  %v231_v28 = vld [vmem:[#allocation2 + $0xc8] sm:$0xff] }
  0x26   :  { %1457 = vmatprep.mubr.msk.f32.mxu1 %vm76_vm0, %v1841_v7  ;;  %1269 = vmatpush3.msra.mxu1 %v221_v8  ;;  %v215_v29 = vld [vmem:[#allocation2 + $0x48] sm:$0xff]  ;;  %v230_v30 = vld [vmem:[#allocation2 + $0xc0] sm:$0xff]  ;;  %v249_v31 = vld [vmem:[#allocation2 + $0x158] sm:$0xff] }
  0x27   :  { %1270 = vmatprep.subr.mxu1 %v236_v10  ;;  %1470 = vmatprep.subr.mxu0 %v251_v19  ;;  %v214_v32 = vld [vmem:[#allocation2 + $0x40] sm:$0xff]  ;;  %v229_v33 = vld [vmem:[#allocation2 + $0xb8] sm:$0xff]  ;;  %v248_v34 = vld [vmem:[#allocation2 + $0x150] sm:$0xff]  ;;  %v1728_v10 = vmov 0.0  }
  0x28   :  { %1271 = vmatpush3.msra.mxu1 %v220_v11  ;;  %1471 = vmatpush3.msra.mxu0 %v251_v19  ;;  %v213_v35 = vld [vmem:[#allocation2 + $0x38] sm:$0xff]  ;;  %v228_v36 = vld [vmem:[#allocation2 + $0xb0] sm:$0xff]  ;;  %v247_v37 = vld [vmem:[#allocation2 + $0x148] sm:$0xff] }
  0x29   :  { %1458 = vmatmul.mubr.msk.f32.gmra.mxu1 %vm76_vm0, %v1851_v13  ;;  %1272 = vmatprep.subr.mxu1 %v235_v14  ;;  %v212_v38 = vld [vmem:[#allocation2 + $0x30] sm:$0xff]  ;;  %v227_v39 = vld [vmem:[#allocation2 + $0xa8] sm:$0xff]  ;;  %v246_v40 = vld [vmem:[#allocation2 + $0x140] sm:$0xff] }
  0x2a   :  { %1460 = vmatprep.mubr.msk.f32.mxu1 %vm76_vm0, %v1856_v15  ;;  %1273 = vmatpush3.msra.mxu1 %v219_v16  ;;  %v211_v41 = vld [vmem:[#allocation2 + $0x28] sm:$0xff]  ;;  %v226_v42 = vld [vmem:[#allocation2 + $0xa0] sm:$0xff]  ;;  %v245_v43 = vld [vmem:[#allocation2 + $0x138] sm:$0xff] }
  0x2b   :  { %1274 = vmatprep.subr.mxu1 %v234_v17  ;;  %1472 = vmatprep.subr.mxu0 %v250_v26  ;;  %v210_v44 = vld [vmem:[#allocation2 + $0x20] sm:$0xff]  ;;  %v225_v45 = vld [vmem:[#allocation2 + $0x98] sm:$0xff]  ;;  %v244_v46 = vld [vmem:[#allocation2 + $0x130] sm:$0xff] }
  0x2c   :  { %1275 = vmatpush3.msra.mxu1 %v218_v18  ;;  %1473 = vmatpush3.msra.mxu0 %v250_v26  ;;  %v209_v47 = vld [vmem:[#allocation2 + $0x18] sm:$0xff]  ;;  %v224_v48 = vld [vmem:[#allocation2 + $0x90] sm:$0xff]  ;;  %v223_v50 = vld [vmem:[#allocation2 + $0x88] sm:$0xff] }
  0x2d   :  { %1461 = vmatmul.mubr.msk.f32.gmra.mxu1 %vm76_vm0, %v1865_v20  ;;  %1276 = vmatprep.subr.mxu1 %v233_v21  ;;  %v208_v49 = vld [vmem:[#allocation2 + $0x10] sm:$0xff]  ;;  %v207_v51 = vld [vmem:[#allocation2 + $0x8] sm:$0xff]  ;;  %v222_v53 = vld [vmem:[#allocation2 + $0x80] sm:$0xff] }
  0x2e   :  { %1463 = vmatprep.mubr.msk.f32.mxu1 %vm76_vm0, %v1870_v22  ;;  %1277 = vmatpush3.msra.mxu1 %v217_v23  ;;  %v243_v52 = vld [vmem:[#allocation2 + $0x128] sm:$0xff]  ;;  %v206_v54 = vld [vmem:[#allocation2] sm:$0xff]  ;;  %v241_v56 = vld [vmem:[#allocation2 + $0x118] sm:$0xff] }
  0x2f   :  { %1278 = vmatprep.subr.mxu1 %v232_v24  ;;  %1474 = vmatprep.subr.mxu0 %v249_v31  ;;  %v242_v55 = vld [vmem:[#allocation2 + $0x120] sm:$0xff]  ;;  %v240_v57 = vld [vmem:[#allocation2 + $0x110] sm:$0xff]  ;;  %v239_v58 = vld [vmem:[#allocation2 + $0x108] sm:$0xff] }
  0x30   :  { %1279 = vmatpush3.msra.mxu1 %v216_v25  ;;  %1475 = vmatpush3.msra.mxu0 %v249_v31  ;;  %v238_v59 = vld [vmem:[#allocation2 + $0x100] sm:$0xff]  ;;  %v1920_v12 = vld [vmem:[%s2168_s8 + $0x58] sm:$0xff]  ;;  %v1927_v14 = vld [vmem:[%s2168_s8 + $0x50] sm:$0xff] }
  0x31   :  { %1464 = vmatmul.mubr.msk.f32.gmra.mxu1 %vm76_vm0, %v1879_v27  ;;  %1280 = vmatprep.subr.mxu1 %v231_v28  ;;  %v1913_v11 = vld [vmem:[%s2168_s8 + $0x60] sm:$0xff]  ;;  %v1934_v16 = vld [vmem:[%s2168_s8 + $0x48] sm:$0xff]  ;;  %v1948_v18 = vld [vmem:[%s2168_s8 + $0x38] sm:$0xff] }
  0x32   :  { %1281 = vmatpush3.msra.mxu1 %v215_v29  ;;  %1476 = vmatprep.subr.mxu0 %v248_v34  ;;  %v1941_v17 = vld [vmem:[%s2168_s8 + $0x40] sm:$0xff]  ;;  %v1955_v19 = vld [vmem:[%s2168_s8 + $0x30] sm:$0xff]  ;;  %v1962_v21 = vld [vmem:[%s2168_s8 + $0x28] sm:$0xff] }
  0x33   :  { %1282 = vmatprep.subr.mxu1 %v230_v30  ;;  %1477 = vmatpush3.msra.mxu0 %v248_v34  ;;  %v1969_v23 = vld [vmem:[%s2168_s8 + $0x20] sm:$0xff]  ;;  %v1975_v24 = vld [vmem:[%s2168_s8 + $0x18] sm:$0xff]  ;;  %v1981_v25 = vld [vmem:[%s2168_s8 + $0x10] sm:$0xff] }
  0x34   :  { %1283 = vmatpush3.msra.mxu1 %v214_v32  ;;  %1478 = vmatprep.subr.mxu0 %v247_v37  ;;  %v1992_v26 = vld [vmem:[%s2168_s8 + $0x8] sm:$0xff]  ;;  %v1999_v28 = vld [vmem:[%s2168_s8] sm:$0xff] }
  0x35   :  { %1284 = vmatprep.subr.mxu1 %v229_v33  ;;  %1479 = vmatpush3.msra.mxu0 %v247_v37 }
  0x36   :  { %1285 = vmatpush3.msra.mxu1 %v213_v35  ;;  %1480 = vmatprep.subr.mxu0 %v246_v40 }
  0x37   :  { %1286 = vmatprep.subr.mxu1 %v228_v36  ;;  %1481 = vmatpush3.msra.mxu0 %v246_v40 }
  0x38   :  { %1287 = vmatpush3.msra.mxu1 %v212_v38  ;;  %1482 = vmatprep.subr.mxu0 %v245_v43 }
  0x39   :  { %1288 = vmatprep.subr.mxu1 %v227_v39  ;;  %1483 = vmatpush3.msra.mxu0 %v245_v43 }
  0x3a   :  { %1289 = vmatpush3.msra.mxu1 %v211_v41  ;;  %1484 = vmatprep.subr.mxu0 %v244_v46 }
  0x3b   :  { %1290 = vmatprep.subr.mxu1 %v226_v42  ;;  %1485 = vmatpush3.msra.mxu0 %v244_v46 }
  0x3c   :  { %1291 = vmatpush3.msra.mxu1 %v210_v44  ;;  %318 = vmatprep.mubr.f32.mxu1 %v1828_v4 }
  0x3d   :  { %1292 = vmatprep.subr.mxu1 %v225_v45  ;;  %1486 = vmatprep.subr.mxu0 %v243_v52 }
  0x3e   :  { %1293 = vmatpush3.msra.mxu1 %v209_v47  ;;  %1487 = vmatpush3.msra.mxu0 %v243_v52 }
  0x3f   :  { %1294 = vmatprep.subr.mxu1 %v224_v48  ;;  %1488 = vmatprep.subr.mxu0 %v242_v55 }
  0x40   :  { %1295 = vmatpush3.msra.mxu1 %v208_v49  ;;  %1489 = vmatpush3.msra.mxu0 %v242_v55 }
  0x41   :  { %1296 = vmatprep.subr.mxu1 %v223_v50  ;;  %1490 = vmatprep.subr.mxu0 %v241_v56 }
  0x42   :  { %1297 = vmatpush3.msra.mxu1 %v207_v51  ;;  %1491 = vmatpush3.msra.mxu0 %v241_v56 }
  0x43   :  { %1298 = vmatprep.subr.mxu1 %v222_v53  ;;  %1492 = vmatprep.subr.mxu0 %v240_v57 }
  0x44   :  { %1299 = vmatpush3.msra.mxu1 %v206_v54  ;;  %1493 = vmatpush3.msra.mxu0 %v240_v57 }
  0x45   :  { %1494 = vmatprep.subr.mxu0 %v239_v58  ;;  %1504 = vmatprep.subr.mxu1 %v1728_v10 }
  0x46   :  { %1495 = vmatpush3.msra.mxu0 %v239_v58 }
  0x47   :  { %1496 = vmatprep.subr.mxu0 %v238_v59 }
  0x48   :  { %1497 = vmatpush3.msra.mxu0 %v238_v59 }
  0x49   :  { %1539 = vmatprep.subr.mxu0 %v1728_v10 }
  0xe5   :  { %v1456_v60 = vpop.f32.mrf.mxu1 }
  0xe7   :  { %v167_v61 = vpop.f32.mrf.mxu1 }
  0xe8   :  { %319 = vmatmul.mubr.f32.vlgmr.msra.gmra.mxu1 %v167_v61 }
  0xe9   :  { %v1459_v62 = vpop.f32.mrf.mxu1  ;;  %323 = vmatprep.mubr.f32.mxu1 %v1819_v3  ;;  %v1891_v3 = vld [vmem:[%s2168_s8 + $0x78] sm:$0xff] }
  0xea   :  { %1505 = vmatpush3.msra.mxu1 %v1891_v3 }
  0xeb   :  { %v177_v63 = vpop.f32.mrf.mxu1  ;;  %1506 = vmatprep.subr.mxu1 %v1728_v10 }
  0xec   :  { %324 = vmatmul.mubr.f32.gmra.mxu1 %v1456_v60 }
  0xed   :  { %v1462_v4 = vpop.f32.mrf.mxu1  ;;  %328 = vmatprep.mubr.f32.mxu1 %v1807_v1  ;;  %v1906_v1 = vld [vmem:[%s2168_s8 + $0x68] sm:$0xff] }
  0xef   :  { %v187_v6 = vpop.f32.mrf.mxu1 }
  0xf0   :  { %329 = vmatmul.mubr.f32.gmra.mxu1 %v177_v63  ;;  %1498 = vmatprep.mubr.f32.mxu0 %v187_v6 }
  0xf1   :  { %v1465_v8 = vpop.f32.mrf.mxu1  ;;  %1499 = vmatmul.mubr.f32.vlgmr.msra.gmra.mxu0 %v1462_v4  ;;  %333 = vmatprep.mubr.f32.mxu1 %v1802_v0  ;;  %v1899_v0 = vld [vmem:[%s2168_s8 + $0x70] sm:$0xff] }
  0xf2   :  { %1507 = vmatpush3.msra.mxu1 %v1899_v0 }
  0xf3   :  { %v197_v9 = vpop.f32.mrf.mxu1  ;;  %1508 = vmatprep.subr.mxu1 %v1728_v10 }
  0xf4   :  { %334 = vmatmul.mubr.f32.gmra.mxu1 %v1459_v62  ;;  %1501 = vmatprep.mubr.f32.mxu0 %v197_v9 }
  0xf5   :  { %1502 = vmatmul.mubr.f32.gmra.mxu0 %v1465_v8  ;;  %1509 = vmatpush3.msra.mxu1 %v1906_v1 }
  0xf6   :  { %1510 = vmatprep.subr.mxu1 %v1728_v10  ;;  %1536 = vmatprep.mubr.msk.f32.mxu1 %vm1729_vm1, %v1728_v10 }
  0xf7   :  { %1511 = vmatpush3.msra.mxu1 %v1913_v11  ;;  %1541 = vmatprep.mubr.msk.f32.mxu0 %vm1729_vm1, %v1728_v10 }
  0xf8   :  { %1512 = vmatprep.subr.mxu1 %v1728_v10 }
  0xf9   :  { %1513 = vmatpush3.msra.mxu1 %v1920_v12 }
  0xfa   :  { %1514 = vmatprep.subr.mxu1 %v1728_v10 }
  0xfb   :  { %1515 = vmatpush3.msra.mxu1 %v1927_v14 }
  0xfc   :  { %1516 = vmatprep.subr.mxu1 %v1728_v10 }
  0xfd   :  { %1517 = vmatpush3.msra.mxu1 %v1934_v16 }
  0xfe   :  { %1518 = vmatprep.subr.mxu1 %v1728_v10 }
  0xff   :  { %1519 = vmatpush3.msra.mxu1 %v1941_v17 }
 0x100   :  { %1520 = vmatprep.subr.mxu1 %v1728_v10 }
 0x101   :  { %1521 = vmatpush3.msra.mxu1 %v1948_v18 }
 0x102   :  { %1522 = vmatprep.subr.mxu1 %v1728_v10 }
 0x103   :  { %1523 = vmatpush3.msra.mxu1 %v1955_v19 }
 0x104   :  { %1524 = vmatprep.subr.mxu1 %v1728_v10 }
 0x105   :  { %1525 = vmatpush3.msra.mxu1 %v1962_v21 }
 0x106   :  { %1526 = vmatprep.subr.mxu1 %v1728_v10 }
 0x107   :  { %1527 = vmatpush3.msra.mxu1 %v1969_v23 }
 0x108   :  { %1528 = vmatprep.subr.mxu1 %v1728_v10 }
 0x109   :  { %1529 = vmatpush3.msra.mxu1 %v1975_v24 }
 0x10a   :  { %1530 = vmatprep.subr.mxu1 %v1728_v10 }
 0x10b   :  { %1531 = vmatpush3.msra.mxu1 %v1981_v25 }
 0x10c   :  { %1532 = vmatprep.subr.mxu1 %v1728_v10 }
 0x10d   :  { %1533 = vmatpush3.msra.mxu1 %v1992_v26 }
 0x10e   :  { %1534 = vmatprep.subr.mxu1 %v1728_v10 }
 0x10f   :  { %1535 = vmatpush3.msra.mxu1 %v1999_v28 }
 0x1a8   :  { %v1300_v29 = vpop.f32.mrf.mxu1 }
 0x1aa   :  { %v1301_v30 = vpop.f32.mrf.mxu1 }
 0x1ab   :  { %v1302_v36 = vadd.f32 %v1301_v30, %v1300_v29 }
 0x1ac   :  { %v1303_v31 = vpop.f32.mrf.mxu1 }
 0x1ae   :  { %v1304_v32 = vpop.f32.mrf.mxu1 }
 0x1af   :  { %v1305_v33 = vadd.f32 %v1304_v32, %v1303_v31 }
 0x1b0   :  { %v1306_v34 = vpop.f32.mrf.mxu1 }
 0x1b1   :  { %v1500_v35 = vpop.f32.mrf.mxu0 }
 0x1b2   :  { %v1307_v37 = vpop.f32.mrf.mxu1  ;;  %v2004_v39 = vadd.f32 %v1500_v35, %v1305_v33  ;;  %v2028_v33 = vld [vmem:[%s2169_s9] sm:$0xff] }
 0x1b3   :  { %v405_v38 = vpop.f32.mrf.mxu0  ;;  %v1308_v43 = vadd.f32 %v1307_v37, %v1306_v34  ;;  %1540 = vmatpush3.msra.mxu0 %v2028_v33 }
 0x1b4   :  { %v2006_v40 = vadd.f32 %v1302_v36, %v405_v38  ;;  %v1309_v41 = vpop.f32.mrf.mxu1  ;;  %v434_v48 = vmul.f32 %v2004_v39, %v2004_v39 }
 0x1b5   :  { %v1503_v42 = vpop.f32.mrf.mxu0 }
 0x1b6   :  { %v433_v44 = vmul.f32 %v2006_v40, %v2006_v40  ;;  %v1310_v45 = vpop.f32.mrf.mxu1  ;;  %v424_v49 = vadd.f32 %v2004_v39, %v2006_v40 }
 0x1b7   :  { %v1311_v46 = vadd.f32 %v1310_v45, %v1309_v41  ;;  %v415_v47 = vpop.f32.mrf.mxu0  ;;  %v547_v45 = vlaneseq }
 0x1b8   :  { %v2014_v50 = vadd.f32 %v1308_v43, %v415_v47  ;;  %v437_v52 = vadd.f32 %v434_v48, %v433_v44  ;;  %v1730_v43 = vmov 1966171168  }
 0x1b9   :  { %v2016_v51 = vadd.f32 %v1503_v42, %v1311_v46  ;;  %v545_v44 = vunpack.c.l.s4 %v1730_v43  ;;  %v2031_v47 = vshrl.u32 %v547_v45, 7 }
 0x1ba   :  { %v425_v53 = vadd.f32 %v424_v49, %v2014_v50  ;;  %v435_v54 = vmul.f32 %v2014_v50, %v2014_v50 }
 0x1bb   :  { %v436_v55 = vmul.f32 %v2016_v51, %v2016_v51  ;;  %v546_v46 = vunpack.c.0.s8 %v545_v44 }
 0x1bc   :  { %v426_v56 = vadd.f32 %v425_v53, %v2016_v51  ;;  %v438_v57 = vadd.f32 %v437_v52, %v435_v54  ;;  %v540_v54 = vld [vmem:[%s2163_s3] sm:$0x1] }
 0x1bd   :  { %v2034_v48 = vsub.s32 %v546_v46, %v2031_v47 }
 0x1be   :  { %v427_v58 = vrot.slane %v426_v56, 4  ;;  %v439_v59 = vadd.f32 %v438_v57, %v436_v55  ;;  %v561_v57 = vld [vmem:[%s2164_s4] sm:$0x1] }
 0x1c0   :  { %v428_v60 = vadd.f32 %v427_v58, %v426_v56  ;;  %v440_v61 = vrot.slane %v439_v59, 4 }
 0x1c2   :  { %v429_v62 = vrot.slane %v428_v60, 2  ;;  %v441_v63 = vadd.f32 %v440_v61, %v439_v59  ;;  %v2045_v59 = vsub.s32 0, %v2031_v47 }
 0x1c4   :  { %v430_v4 = vadd.f32 %v429_v62, %v428_v60  ;;  %v442_v6 = vrot.slane %v441_v63, 2 }
 0x1c6   :  { %v431_v8 = vrot.slane %v430_v4, 1  ;;  %v443_v9 = vadd.f32 %v442_v6, %v441_v63  ;;  %v818_v63 = vld [vmem:[#allocation5 + $0x178] sm:$0xff]  ;;  %v816_v6 = vld [vmem:[#allocation5 + $0x168] sm:$0xff] }
 0x1c7   :  { %1564 = vmatprep.subr.mxu1 %v818_v63 }
 0x1c8   :  { %v444_v29 = vrot.slane %v443_v9, 1  ;;  %v432_v30 = vadd.f32 %v431_v8, %v430_v4  ;;  %v817_v4 = vld [vmem:[#allocation5 + $0x170] sm:$0xff]  ;;  %v815_v8 = vld [vmem:[#allocation5 + $0x160] sm:$0xff] }
 0x1ca   :  { %v445_v31 = vadd.f32 %v444_v29, %v443_v9  ;;  %v814_v9 = vld [vmem:[#allocation5 + $0x158] sm:$0xff]  ;;  %v813_v29 = vld [vmem:[#allocation5 + $0x150] sm:$0xff] }
 0x1cc   :  { %v447_v32 = vsel %vm446_vm2, %v432_v30, %v445_v31  ;;  %v812_v30 = vld [vmem:[#allocation5 + $0x148] sm:$0xff]  ;;  %v810_v31 = vld [vmem:[#allocation5 + $0x138] sm:$0xff] }
 0x1cd   :  { %1537 = vmatmul.mubr.f32.vlgmr.msra.gmra.mxu1 %v447_v32  ;;  %v809_v32 = vld [vmem:[#allocation5 + $0x130] sm:$0xff] }
 0x1ce   :  { %1565 = vmatpush3.msra.mxu1 %v818_v63  ;;  %v781_v63 = vld [vmem:[#allocation5 + $0x50] sm:$0xff] }
 0x1cf   :  { %1566 = vmatprep.subr.mxu1 %v817_v4 }
 0x1d0   :  { %1567 = vmatpush3.msra.mxu1 %v817_v4  ;;  %v780_v4 = vld [vmem:[#allocation5 + $0x48] sm:$0xff] }
 0x1d1   :  { %1568 = vmatprep.subr.mxu1 %v816_v6 }
 0x1d2   :  { %1569 = vmatpush3.msra.mxu1 %v816_v6  ;;  %v779_v6 = vld [vmem:[#allocation5 + $0x40] sm:$0xff] }
 0x1d3   :  { %1570 = vmatprep.subr.mxu1 %v815_v8 }
 0x1d4   :  { %1571 = vmatpush3.msra.mxu1 %v815_v8  ;;  %v794_v8 = vld [vmem:[#allocation5 + $0xb8] sm:$0xff] }
 0x1d5   :  { %1572 = vmatprep.subr.mxu1 %v814_v9 }
 0x1d6   :  { %1573 = vmatpush3.msra.mxu1 %v814_v9  ;;  %v793_v9 = vld [vmem:[#allocation5 + $0xb0] sm:$0xff] }
 0x1d7   :  { %1574 = vmatprep.subr.mxu1 %v813_v29 }
 0x1d8   :  { %1575 = vmatpush3.msra.mxu1 %v813_v29  ;;  %v792_v29 = vld [vmem:[#allocation5 + $0xa8] sm:$0xff] }
 0x1d9   :  { %1576 = vmatprep.subr.mxu1 %v812_v30 }
 0x1da   :  { %1577 = vmatpush3.msra.mxu1 %v812_v30  ;;  %v776_v30 = vld [vmem:[#allocation5 + $0x28] sm:$0xff] }
 0x28d   :  { %v530_v34 = vpop.f32.mrf.mxu1 }
 0x28e   :  { %v534_v35 = vmul.f32 0.001953125, %v530_v34  ;;  %v656_v34 = vsub.s32 1, %v2031_v47  ;;  %v1655_v47 = vld [vmem:[%s2160_s0 + $0x8] sm:$0xff] }
 0x28f   :  { %v1538_v36 = vpop.f32.mrf.mxu1 }
 0x290   :  { %v535_v37 = vmul.f32 %v534_v35, %v534_v35 }
 0x292   :  { %v537_v38 = vrot.slane %v535_v37, 7 }
 0x294   :  { %v539_v41 = vsub.f32 %v534_v35, %v537_v38 }
 0x296   :  { %v541_v42 = vadd.f32 1e-05, %v539_v41 }
 0x298   :  { %1650 = vrsqrt.f32 %v541_v42 }
 0x2a5   :  { %v1651_v49 = vpop.eup %1650 }
 0x2a6   :  { %v550_v52 = vrot.slane %v1651_v49, %v2034_v48 }
 0x2a8   :  { %v551_v53 = vcombine.high %v550_v52, %v550_v52 }
 0x2aa   :  { %v558_v55 = vrot.slane %v551_v53, %v2034_v48 }
 0x2ac   :  { %v560_v56 = vmul.f32 %v558_v55, %v540_v54  ;;  %v801_v55 = vld [vmem:[#allocation5 + $0xf0] sm:$0xff] }
 0x2ae   :  { %v562_v58 = vmul.f32 %v560_v56, %v534_v35 }
 0x2b0   :  { %v563_v60 = vsub.f32 %v561_v57, %v562_v58  ;;  %v800_v57 = vld [vmem:[#allocation5 + $0xe8] sm:$0xff] }
 0x2b1   :  { %v784_v58 = vld [vmem:[#allocation5 + $0x68] sm:$0xff] }
 0x2b2   :  { %v568_v61 = vrot.slane %v563_v60, %v2045_v59  ;;  %v799_v60 = vld [vmem:[#allocation5 + $0xe0] sm:$0xff] }
 0x2b4   :  { %v570_v62 = vsel %vm446_vm2, %v560_v56, %v568_v61  ;;  %v785_v56 = vld [vmem:[#allocation5 + $0x70] sm:$0xff]  ;;  %v783_v61 = vld [vmem:[#allocation5 + $0x60] sm:$0xff] }
 0x2b5   :  { %1542 = vmatmul.mubr.msk.f32.vlgmr.msra.gmra.mxu0 %vm572_vm3, %v570_v62  ;;  %v782_v62 = vld [vmem:[#allocation5 + $0x58] sm:$0xff] }
 0x2b6   :  { %1552 = vmatprep.mubr.msk.f32.mxu0 %vm76_vm0, %v1813_v2  ;;  %v811_v2 = vld [vmem:[#allocation5 + $0x140] sm:$0xff] }
 0x2b7   :  { %1578 = vmatprep.subr.mxu1 %v811_v2 }
 0x2b8   :  { %1579 = vmatpush3.msra.mxu1 %v811_v2  ;;  %v791_v2 = vld [vmem:[#allocation5 + $0xa0] sm:$0xff] }
 0x2b9   :  { %1580 = vmatprep.subr.mxu1 %v810_v31 }
 0x2ba   :  { %1581 = vmatpush3.msra.mxu1 %v810_v31  ;;  %v775_v31 = vld [vmem:[#allocation5 + $0x20] sm:$0xff] }
 0x2bb   :  { %1582 = vmatprep.subr.mxu1 %v809_v32 }
 0x2bc   :  { %1583 = vmatpush3.msra.mxu1 %v809_v32  ;;  %v774_v32 = vld [vmem:[#allocation5 + $0x18] sm:$0xff] }
 0x375   :  { %v642_v35 = vpop.f32.mrf.mxu0 }
 0x376   :  { %v649_v36 = vrot.slane %v642_v35, %v2045_v59  ;;  %v657_v38 = vrot.slane %v642_v35, %v656_v34  ;;  %v789_v35 = vld [vmem:[#allocation5 + $0x90] sm:$0xff] }
 0x377   :  { %v1543_v37 = vpop.f32.mrf.mxu0 }
 0x378   :  { %v653_v41 = vmul.f32 %v649_v36, %v2016_v51  ;;  %v652_v42 = vmul.f32 %v649_v36, %v2014_v50  ;;  %v651_v43 = vmul.f32 %v649_v36, %v2004_v39  ;;  %v650_v46 = vmul.f32 %v649_v36, %v2006_v40  ;;  %v802_v40 = vld [vmem:[#allocation5 + $0xf8] sm:$0xff]  ;;  %v773_v36 = vld [vmem:[#allocation5 + $0x10] sm:$0xff]  ;;  %v788_v37 = vld [vmem:[#allocation5 + $0x88] sm:$0xff] }
 0x379   :  { %v786_v50 = vld [vmem:[#allocation5 + $0x78] sm:$0xff] }
 0x37a   :  { %v661_v44 = vadd.f32 %v657_v38, %v653_v41  ;;  %v660_v45 = vadd.f32 %v657_v38, %v652_v42  ;;  %v659_v52 = vadd.f32 %v657_v38, %v651_v43  ;;  %v658_v54 = vadd.f32 %v657_v38, %v650_v46  ;;  %v772_v38 = vld [vmem:[#allocation5 + $0x8] sm:$0xff]  ;;  %v787_v42 = vld [vmem:[#allocation5 + $0x80] sm:$0xff]  ;;  %v805_v46 = vld [vmem:[#allocation5 + $0x110] sm:$0xff] }
 0x37b   :  { %v808_v41 = vld [vmem:[#allocation5 + $0x128] sm:$0xff]  ;;  %v771_v43 = vld [vmem:[#allocation5] sm:$0xff] }
 0x37c   :  { %v2060_v49 = vmax.f32 %v661_v44, 0.0  ;;  %v2063_v53 = vmax.f32 %v660_v45, 0.0  ;;  %v2067_v51 = vmax.f32 %v659_v52, 0.0  ;;  %v662_v39 = vmax.f32 %v658_v54, 0.0  ;;  %1584 = vmatprep.subr.mxu1 %v808_v41  ;;  %v807_v44 = vld [vmem:[#allocation5 + $0x120] sm:$0xff]  ;;  %v806_v45 = vld [vmem:[#allocation5 + $0x118] sm:$0xff] }
 0x37d   :  { %1585 = vmatpush3.msra.mxu1 %v808_v41  ;;  %v804_v52 = vld [vmem:[#allocation5 + $0x108] sm:$0xff]  ;;  %v803_v54 = vld [vmem:[#allocation5 + $0x100] sm:$0xff] }
 0x37e   :  { %1544 = vmatprep.subr.mxu0 %v2060_v49  ;;  %1586 = vmatprep.subr.mxu1 %v807_v44 }
 0x37f   :  { %1545 = vmatpush3.msra.mxu0 %v2060_v49  ;;  %1587 = vmatpush3.msra.mxu1 %v807_v44 }
 0x380   :  { %1546 = vmatprep.subr.mxu0 %v2063_v53  ;;  %1588 = vmatprep.subr.mxu1 %v806_v45 }
 0x381   :  { %1547 = vmatpush3.msra.mxu0 %v2063_v53  ;;  %1589 = vmatpush3.msra.mxu1 %v806_v45 }
 0x382   :  { %1548 = vmatprep.subr.mxu0 %v2067_v51  ;;  %1590 = vmatprep.subr.mxu1 %v805_v46 }
 0x383   :  { %1549 = vmatpush3.msra.mxu0 %v2067_v51  ;;  %1591 = vmatpush3.msra.mxu1 %v805_v46 }
 0x384   :  { %1550 = vmatprep.subr.mxu0 %v662_v39  ;;  %1592 = vmatprep.subr.mxu1 %v804_v52 }
 0x385   :  { %1551 = vmatpush3.msra.mxu0 %v662_v39  ;;  %1593 = vmatpush3.msra.mxu1 %v804_v52 }
 0x386   :  { %1553 = vmatmul.mubr.msk.f32.vlgmr.msra.gmra.mxu0 %vm76_vm0, %v1835_v5  ;;  %1363 = vmatprep.subr.mxu0 %v802_v40  ;;  %v798_v5 = vld [vmem:[#allocation5 + $0xd8] sm:$0xff] }
 0x387   :  { %1555 = vmatprep.mubr.msk.f32.mxu0 %vm76_vm0, %v1841_v7  ;;  %1364 = vmatpush3.msra.mxu0 %v786_v50  ;;  %v797_v7 = vld [vmem:[#allocation5 + $0xd0] sm:$0xff] }
 0x388   :  { %1365 = vmatprep.subr.mxu0 %v801_v55  ;;  %1594 = vmatprep.subr.mxu1 %v803_v54 }
 0x389   :  { %1366 = vmatpush3.msra.mxu0 %v785_v56  ;;  %1595 = vmatpush3.msra.mxu1 %v803_v54 }
 0x38a   :  { %1556 = vmatmul.mubr.msk.f32.gmra.mxu0 %vm76_vm0, %v1851_v13  ;;  %1367 = vmatprep.subr.mxu0 %v800_v57  ;;  %v796_v13 = vld [vmem:[#allocation5 + $0xc8] sm:$0xff] }
 0x38b   :  { %1558 = vmatprep.mubr.msk.f32.mxu0 %vm76_vm0, %v1856_v15  ;;  %1368 = vmatpush3.msra.mxu0 %v784_v58  ;;  %v795_v15 = vld [vmem:[#allocation5 + $0xc0] sm:$0xff] }
 0x38c   :  { %1369 = vmatprep.subr.mxu0 %v799_v60  ;;  %1637 = vmatprep.subr.mxu1 %v1728_v10 }
 0x38d   :  { %1370 = vmatpush3.msra.mxu0 %v783_v61 }
 0x38e   :  { %1559 = vmatmul.mubr.msk.f32.gmra.mxu0 %vm76_vm0, %v1865_v20  ;;  %1371 = vmatprep.subr.mxu0 %v798_v5  ;;  %v778_v20 = vld [vmem:[#allocation5 + $0x38] sm:$0xff] }
 0x38f   :  { %1561 = vmatprep.mubr.msk.f32.mxu0 %vm76_vm0, %v1870_v22  ;;  %1372 = vmatpush3.msra.mxu0 %v782_v62  ;;  %v777_v22 = vld [vmem:[#allocation5 + $0x30] sm:$0xff] }
 0x390   :  { %1373 = vmatprep.subr.mxu0 %v797_v7 }
 0x391   :  { %1374 = vmatpush3.msra.mxu0 %v781_v63 }
 0x392   :  { %1562 = vmatmul.mubr.msk.f32.gmra.mxu0 %vm76_vm0, %v1879_v27  ;;  %1375 = vmatprep.subr.mxu0 %v796_v13  ;;  %v790_v27 = vld [vmem:[#allocation5 + $0x98] sm:$0xff] }
 0x393   :  { %883 = vmatprep.mubr.f32.mxu0 %v662_v39  ;;  %1376 = vmatpush3.msra.mxu0 %v780_v4 }
 0x394   :  { %1377 = vmatprep.subr.mxu0 %v795_v15 }
 0x395   :  { %1378 = vmatpush3.msra.mxu0 %v779_v6 }
 0x396   :  { %1379 = vmatprep.subr.mxu0 %v794_v8 }
 0x397   :  { %1380 = vmatpush3.msra.mxu0 %v778_v20 }
 0x398   :  { %1381 = vmatprep.subr.mxu0 %v793_v9 }
 0x399   :  { %1382 = vmatpush3.msra.mxu0 %v777_v22 }
 0x39a   :  { %1383 = vmatprep.subr.mxu0 %v792_v29 }
 0x39b   :  { %1384 = vmatpush3.msra.mxu0 %v776_v30 }
 0x39c   :  { %1385 = vmatprep.subr.mxu0 %v791_v2 }
 0x39d   :  { %1386 = vmatpush3.msra.mxu0 %v775_v31 }
 0x39e   :  { %1387 = vmatprep.subr.mxu0 %v790_v27 }
 0x39f   :  { %1388 = vmatpush3.msra.mxu0 %v774_v32 }
 0x3a0   :  { %1389 = vmatprep.subr.mxu0 %v789_v35 }
 0x3a1   :  { %1390 = vmatpush3.msra.mxu0 %v773_v36 }
 0x3a2   :  { %1391 = vmatprep.subr.mxu0 %v788_v37 }
 0x3a3   :  { %1392 = vmatpush3.msra.mxu0 %v772_v38 }
 0x3a4   :  { %1393 = vmatprep.subr.mxu0 %v787_v42 }
 0x3a5   :  { %1394 = vmatpush3.msra.mxu0 %v771_v43 }
 0x3a6   :  { %1602 = vmatprep.subr.mxu0 %v1728_v10 }
 0x446   :  { %v1554_v39 = vpop.f32.mrf.mxu0 }
 0x448   :  { %v732_v40 = vpop.f32.mrf.mxu0 }
 0x449   :  { %884 = vmatmul.mubr.f32.vlgmr.msra.gmra.mxu0 %v732_v40  ;;  %v1088_v40 = vld [vmem:[%s2166_s6] sm:$0x1]  ;;  %s1731_s6 = smov [#allocation7]  }
 0x44a   :  { %v1557_v50 = vpop.f32.mrf.mxu0  ;;  %888 = vmatprep.mubr.f32.mxu0 %v2067_v51  ;;  %1603 = vmatpush3.msra.mxu0 %v1891_v3 }
 0x44b   :  { %1604 = vmatprep.subr.mxu0 %v1728_v10 }
 0x44c   :  { %v742_v55 = vpop.f32.mrf.mxu0  ;;  %1605 = vmatpush3.msra.mxu0 %v1899_v0 }
 0x44d   :  { %889 = vmatmul.mubr.f32.gmra.mxu0 %v1554_v39  ;;  %1606 = vmatprep.subr.mxu0 %v1728_v10 }
 0x44e   :  { %v1560_v56 = vpop.f32.mrf.mxu0  ;;  %893 = vmatprep.mubr.f32.mxu0 %v2063_v53  ;;  %1607 = vmatpush3.msra.mxu0 %v1906_v1 }
 0x44f   :  { %1608 = vmatprep.subr.mxu0 %v1728_v10 }
 0x450   :  { %v752_v57 = vpop.f32.mrf.mxu0  ;;  %1609 = vmatpush3.msra.mxu0 %v1913_v11 }
 0x451   :  { %894 = vmatmul.mubr.f32.gmra.mxu0 %v742_v55  ;;  %1596 = vmatprep.mubr.f32.mxu1 %v752_v57 }
 0x452   :  { %v1563_v3 = vpop.f32.mrf.mxu0  ;;  %898 = vmatprep.mubr.f32.mxu0 %v2060_v49  ;;  %1597 = vmatmul.mubr.f32.vlgmr.msra.gmra.mxu1 %v1560_v56  ;;  %v1109_v56 = vld [vmem:[%s2167_s7] sm:$0x1]  ;;  %s1225_s7 = sshll.u32 %s1731_s6, 4  ;;  %s1226_s7 = int_to_ptr.vmem [resolvable:$true] %s1225_s7 }
 0x453   :  { %1610 = vmatprep.subr.mxu0 %v1728_v10  ;;  %1638 = vmatpush3.msra.mxu1 %v2028_v33  ;;  %s1698_s30 = scalar_lea.vmem %s1226_s7, 512  ;;  %p1703_p11 = scmp.lt.s32.totalorder %s1226_s7, %s1226_s7 }
 0x454   :  { %v762_v0 = vpop.f32.mrf.mxu0  ;;  %1611 = vmatpush3.msra.mxu0 %v1920_v12  ;;  %p1699_p10 = scmp.ne.s32.totalorder %s1226_s7, %s1698_s30  ;;  %p1704_p12 = scmp.lt.s32.totalorder %s1698_s30, %s1698_s30 }
 0x455   :  { %899 = vmatmul.mubr.f32.gmra.mxu0 %v1557_v50  ;;  %1599 = vmatprep.mubr.f32.mxu1 %v762_v0 }
 0x456   :  { %1600 = vmatmul.mubr.f32.gmra.mxu1 %v1563_v3  ;;  %1612 = vmatprep.subr.mxu0 %v1728_v10  ;;  %p1705_p13 = por %p1704_p12, %p1703_p11 }
 0x457   :  { %1613 = vmatpush3.msra.mxu0 %v1927_v14  ;;  %1634 = vmatprep.mubr.msk.f32.mxu0 %vm1729_vm1, %v1728_v10 }
 0x458   :  { %1614 = vmatprep.subr.mxu0 %v1728_v10  ;;  %1639 = vmatprep.mubr.msk.f32.mxu1 %vm1729_vm1, %v1728_v10  ;;  %p1706_p0 = pnand %p1705_p13, %p1699_p10 }
 0x459   :  { %1615 = vmatpush3.msra.mxu0 %v1934_v16 }
 0x45a   :  { %1616 = vmatprep.subr.mxu0 %v1728_v10 }
 0x45b   :  { %1617 = vmatpush3.msra.mxu0 %v1941_v17 }
 0x45c   :  { %1618 = vmatprep.subr.mxu0 %v1728_v10 }
 0x45d   :  { %1619 = vmatpush3.msra.mxu0 %v1948_v18 }
 0x45e   :  { %1620 = vmatprep.subr.mxu0 %v1728_v10 }
 0x45f   :  { %1621 = vmatpush3.msra.mxu0 %v1955_v19 }
 0x460   :  { %1622 = vmatprep.subr.mxu0 %v1728_v10 }
 0x461   :  { %1623 = vmatpush3.msra.mxu0 %v1962_v21 }
 0x462   :  { %1624 = vmatprep.subr.mxu0 %v1728_v10 }
 0x463   :  { %1625 = vmatpush3.msra.mxu0 %v1969_v23 }
 0x464   :  { %1626 = vmatprep.subr.mxu0 %v1728_v10 }
 0x465   :  { %1627 = vmatpush3.msra.mxu0 %v1975_v24 }
 0x466   :  { %1628 = vmatprep.subr.mxu0 %v1728_v10 }
 0x467   :  { %1629 = vmatpush3.msra.mxu0 %v1981_v25 }
 0x468   :  { %1630 = vmatprep.subr.mxu0 %v1728_v10 }
 0x469   :  { %1631 = vmatpush3.msra.mxu0 %v1992_v26 }
 0x46a   :  { %1632 = vmatprep.subr.mxu0 %v1728_v10 }
 0x46b   :  { %1633 = vmatpush3.msra.mxu0 %v1999_v28 }
 0x509   :  { %v1395_v1 = vpop.f32.mrf.mxu0 }
 0x50b   :  { %v1396_v11 = vpop.f32.mrf.mxu0 }
 0x50c   :  { %v1397_v19 = vadd.f32 %v1396_v11, %v1395_v1 }
 0x50d   :  { %v1398_v12 = vpop.f32.mrf.mxu0 }
 0x50f   :  { %v1399_v14 = vpop.f32.mrf.mxu0 }
 0x510   :  { %v1400_v16 = vadd.f32 %v1399_v14, %v1398_v12 }
 0x511   :  { %v1401_v17 = vpop.f32.mrf.mxu0 }
 0x512   :  { %v1598_v18 = vpop.f32.mrf.mxu1 }
 0x513   :  { %v1402_v21 = vpop.f32.mrf.mxu0  ;;  %v976_v24 = vadd.f32 %v1598_v18, %v1400_v16 }
 0x514   :  { %v970_v23 = vpop.f32.mrf.mxu1  ;;  %v1403_v53 = vadd.f32 %v1402_v21, %v1401_v17 }
 0x515   :  { %v971_v25 = vadd.f32 %v1397_v19, %v970_v23  ;;  %v1404_v33 = vpop.f32.mrf.mxu0  ;;  %v999_v28 = vmul.f32 %v976_v24, %v976_v24 }
 0x516   :  { %v1601_v49 = vpop.f32.mrf.mxu1 }
 0x517   :  { %v998_v26 = vmul.f32 %v971_v25, %v971_v25  ;;  %v1405_v51 = vpop.f32.mrf.mxu0  ;;  %v989_v60 = vadd.f32 %v976_v24, %v971_v25 }
 0x518   :  { %v1406_v10 = vadd.f32 %v1405_v51, %v1404_v33  ;;  %v980_v58 = vpop.f32.mrf.mxu1 }
 0x519   :  { %v981_v61 = vadd.f32 %v1403_v53, %v980_v58  ;;  %v1002_v62 = vadd.f32 %v999_v28, %v998_v26  ;;  %v1654_v53 = vld [vmem:[%s2160_s0] sm:$0xff] }
 0x51a   :  { %v986_v5 = vadd.f32 %v1601_v49, %v1406_v10 }
 0x51b   :  { %v990_v7 = vadd.f32 %v989_v60, %v981_v61  ;;  %v1000_v63 = vmul.f32 %v981_v61, %v981_v61 }
 0x51c   :  { %v1001_v13 = vmul.f32 %v986_v5, %v986_v5 }
 0x51d   :  { %v991_v4 = vadd.f32 %v990_v7, %v986_v5  ;;  %v1003_v15 = vadd.f32 %v1002_v62, %v1000_v63 }
 0x51f   :  { %v992_v6 = vrot.slane %v991_v4, 4  ;;  %v1004_v8 = vadd.f32 %v1003_v15, %v1001_v13 }
 0x521   :  { %v993_v20 = vadd.f32 %v992_v6, %v991_v4  ;;  %v1005_v9 = vrot.slane %v1004_v8, 4 }
 0x523   :  { %v994_v22 = vrot.slane %v993_v20, 2  ;;  %v1006_v29 = vadd.f32 %v1005_v9, %v1004_v8 }
 0x525   :  { %v995_v30 = vadd.f32 %v994_v22, %v993_v20  ;;  %v1007_v2 = vrot.slane %v1006_v29, 2 }
 0x527   :  { %v996_v31 = vrot.slane %v995_v30, 1  ;;  %v1008_v27 = vadd.f32 %v1007_v2, %v1006_v29 }
 0x529   :  { %v1009_v32 = vrot.slane %v1008_v27, 1  ;;  %v997_v35 = vadd.f32 %v996_v31, %v995_v30 }
 0x52b   :  { %v1010_v36 = vadd.f32 %v1009_v32, %v1008_v27 }
 0x52d   :  { %v1011_v37 = vsel %vm446_vm2, %v997_v35, %v1010_v36 }
 0x52e   :  { %1635 = vmatmul.mubr.f32.vlgmr.msra.gmra.mxu0 %v1011_v37 }
 0x5ee   :  { %v1078_v38 = vpop.f32.mrf.mxu0 }
 0x5ef   :  { %v1082_v41 = vmul.f32 0.001953125, %v1078_v38 }
 0x5f0   :  { %v1636_v42 = vpop.f32.mrf.mxu0 }
 0x5f1   :  { %v1083_v43 = vmul.f32 %v1082_v41, %v1082_v41 }
 0x5f3   :  { %v1085_v44 = vrot.slane %v1083_v43, 7 }
 0x5f5   :  { %v1087_v45 = vsub.f32 %v1082_v41, %v1085_v44 }
 0x5f7   :  { %v1089_v46 = vadd.f32 1e-05, %v1087_v45 }
 0x5f9   :  { %1652 = vrsqrt.f32 %v1089_v46 }
 0x606   :  { %v1653_v52 = vpop.eup %1652 }
 0x607   :  { %v1098_v54 = vrot.slane %v1653_v52, %v2034_v48 }
 0x609   :  { %v1099_v39 = vcombine.high %v1098_v54, %v1098_v54 }
 0x60b   :  { %v1106_v50 = vrot.slane %v1099_v39, %v2034_v48 }
 0x60d   :  { %v1108_v55 = vmul.f32 %v1106_v50, %v1088_v40 }
 0x60f   :  { %v1110_v57 = vmul.f32 %v1108_v55, %v1082_v41 }
 0x611   :  { %v1111_v3 = vsub.f32 %v1109_v56, %v1110_v57 }
 0x613   :  { %v1116_v0 = vrot.slane %v1111_v3, %v2045_v59 }
 0x615   :  { %v1118_v1 = vsel %vm446_vm2, %v1108_v55, %v1116_v0 }
 0x616   :  { %1640 = vmatmul.mubr.msk.f32.vlgmr.msra.gmra.mxu1 %vm572_vm3, %v1118_v1 }
 0x6d6   :  { %v1188_v11 = vpop.f32.mrf.mxu1 }
 0x6d7   :  { %v1195_v12 = vrot.slane %v1188_v11, %v2045_v59  ;;  %v1203_v14 = vrot.slane %v1188_v11, %v656_v34  ;;  %v1656_v34 = vld [vmem:[%s2160_s0 + $0x10] sm:$0xff] }
 0x6d8   :  { %v1641_v48 = vpop.f32.mrf.mxu1 }
 0x6d9   :  { %v1196_v16 = vmul.f32 %v1195_v12, %v971_v25  ;;  %v1197_v17 = vmul.f32 %v1195_v12, %v976_v24  ;;  %v1198_v18 = vmul.f32 %v1195_v12, %v981_v61  ;;  %v1199_v19 = vmul.f32 %v1195_v12, %v986_v5  ;;  %v1657_v25 = vld [vmem:[%s2160_s0 + $0x18] sm:$0xff] }
 0x6db   :  { %v1204_v21 = vadd.f32 %v1203_v14, %v1196_v16  ;;  %v1205_v23 = vadd.f32 %v1203_v14, %v1197_v17  ;;  %v1206_v33 = vadd.f32 %v1203_v14, %v1198_v18  ;;  %v1207_v49 = vadd.f32 %v1203_v14, %v1199_v19 }
 0x6dd   :  { %v1208_v26 = vadd.f32 %v1654_v53, %v1204_v21  ;;  %v1209_v59 = vadd.f32 %v1655_v47, %v1205_v23  ;;  %v1210_v24 = vadd.f32 %v1656_v34, %v1206_v33  ;;  %v1211_v51 = vadd.f32 %v1657_v25, %v1207_v49 }
 0x6df   :  { %v1212_v10 = vmax.f32 %v1208_v26, 0.0  ;;  %v1213_v58 = vmax.f32 %v1209_v59, 0.0  ;;  %v1214_v28 = vmax.f32 %v1210_v24, 0.0  ;;  %v1215_v60 = vmax.f32 %v1211_v51, 0.0 }
 0x6e1   :  { %1216 = vst [vmem:[#allocation7] sm:$0xff] %v1212_v10  ;;  %1217 = vst [vmem:[#allocation7 + $0x8] sm:$0xff] %v1213_v58 }
 0x6e2   :  { %1218 = vst [vmem:[#allocation7 + $0x10] sm:$0xff] %v1214_v28  ;;  %1219 = vst [vmem:[#allocation7 + $0x18] sm:$0xff] %v1215_v60 }
 0x6e3   :  { %1709 = shalt.err (!%p1706_p0)
}
 0x6e4   :  { %1231 = dma.vmem_to_hbm [thread:$0]  %s1226_s7, 512, %s2170_s10, [#allocation4], %s1725_s16, %s1725_s16, %s1726_s17  }
 0x6e5   :  { %1722 = dma.done.wait [#allocation4], 512  }
 0x6e6   :  { %1723 = vsyncadd [#allocation4], 4294966784 }
 0x6e7   :  { %1235 = vsyncpa [#allocation3], 1 }
 0x6e8   :  { %1236 = vsyncpa [#allocation6], 1 }
 0x6e9   :  { %1237 = vsyncpa [#allocation4], 1 }

</bundles_post_ra>
